<compile_context>
chip_gen: v7x
topology: tpu7x:2x2x1
jax: 0.10.0
libtpu: 0.0.40
codegen_flags: <defaults>
</compile_context>

<pallas_src>
import jax
import jax.numpy as jnp
from jax.experimental import pallas as pl
from jax.experimental.pallas import tpu as pltpu

OUT_DTYPE = jnp.bfloat16  # matmul-branch output dtype (original returns half)


# --------------------------------------------------------------------------- #
# Kernels
# --------------------------------------------------------------------------- #
def _bmm_kernel_interleaved(y_ref, z_ref, o_ref):
    """No-transpose path.

    y_ref: (tb, M*K) -- original (B, M, K) memory, k fastest along lanes.
    z_ref: (tb, K)   -- per-(batch, k) scale.
    o_ref: (tb, M)   -- lane-dense output.
    """
    K = z_ref.shape[1]
    M = o_ref.shape[1]
    zv = z_ref[...].astype(jnp.float32)                        # (tb, K)
    # Unrolled K=4 VPU reduce; strided lane slices deinterleave the k planes.
    acc = y_ref[:, pl.ds(0, M, stride=K)].astype(jnp.float32) * zv[:, 0:1]
    for k in range(1, K):
        acc = acc + y_ref[:, pl.ds(k, M, stride=K)].astype(jnp.float32) * zv[:, k:k + 1]
    o_ref[...] = acc.astype(o_ref.dtype)


def _bmm_kernel_planar(y_ref, z_ref, o_ref):
    """Fallback path (y pre-transposed to (B, K, M) in the wrapper).

    y_ref: (tb, K, M); z_ref: (tb, K); o_ref: (tb, M).
    """
    K = z_ref.shape[1]
    zv = z_ref[...].astype(jnp.float32)                        # (tb, K)
    acc = y_ref[:, 0, :].astype(jnp.float32) * zv[:, 0:1]
    for k in range(1, K):
        acc = acc + y_ref[:, k, :].astype(jnp.float32) * zv[:, k:k + 1]
    o_ref[...] = acc.astype(o_ref.dtype)


# --------------------------------------------------------------------------- #
# Tiling / tuning
# --------------------------------------------------------------------------- #
def _device_tuning():
    """Generation-specific batch-tile target / VMEM budget (review items)."""
    kind = ""
    try:
        kind = jax.devices()[0].device_kind.lower()
    except Exception:
        pass
    if "v7" in kind:
        # 64 MiB VMEM per TC, 2 TCs: cap tiles, keep grid-step count EVEN.
        return dict(tb_target=320, vmem_limit=48 * 1024 * 1024, even_steps=True)
    if "v6" in kind or "v5 lite" in kind or "v5e" in kind or "v5litepod" in kind:
        # 128 MiB VMEM: larger tiles -> fewer grid steps on a mem-bound kernel.
        return dict(tb_target=512, vmem_limit=64 * 1024 * 1024, even_steps=False)
    # Unknown / other generation: conservative defaults.
    return dict(tb_target=256, vmem_limit=48 * 1024 * 1024, even_steps=False)


def _pick_batch_tile(batch, per_batch_bytes, target, vmem_budget, even_steps):
    """Largest legal divisor of `batch` that respects the VMEM byte budget.

    Legality: tb % 8 == 0 or tb == batch (sublane tiling rule for the block's
    second-to-last dim).  Budget assumes double-buffered input+output blocks.
    """
    legal = [tb for tb in range(1, batch + 1)
             if batch % tb == 0 and (tb % 8 == 0 or tb == batch)]
    budget = int(0.85 * vmem_budget)
    fitting = [tb for tb in legal
               if tb <= target and 2 * tb * per_batch_bytes <= budget]
    if not fitting:
        fitting = [min(legal)]        # smallest legal tile as last resort
    if even_steps:                    # v7x: balance the 2 TensorCores
        even = [tb for tb in fitting if (batch // tb) % 2 == 0]
        if even:
            return max(even)
    return max(fitting)


# --------------------------------------------------------------------------- #
# Wrapper
# --------------------------------------------------------------------------- #
def _batched_matvec(y, z, *, use_fast):
    """y: (B, M, K), z: (B, K, 1) -> (B, M, 1) OUT_DTYPE via a Pallas kernel."""
    B, M, K = y.shape
    tune = _device_tuning()
    in_item = jnp.dtype(y.dtype).itemsize
    out_item = jnp.dtype(OUT_DTYPE).itemsize

    # Planar path pads the K sublanes of the (tb, K, M) block up to 8.
    k_rows = K if use_fast else max(K, 8)
    per_batch_bytes = M * k_rows * in_item + M * out_item + 2048
    tb = _pick_batch_tile(B, per_batch_bytes, tune["tb_target"],
                          tune["vmem_limit"], tune["even_steps"])
    nb = B // tb

    z2 = z.reshape(B, K)                       # drop trailing 1: 2-D z block
    if use_fast:
        y_in = y.reshape(B, M * K)             # free contiguous reshape, no HBM pass
        y_spec = pl.BlockSpec((tb, M * K), lambda b: (b, 0))
        kern = _bmm_kernel_interleaved
    else:
        y_in = jnp.transpose(y, (0, 2, 1))     # (B, K, M): one contiguous DMA / tile
        y_spec = pl.BlockSpec((tb, K, M), lambda b: (b, 0, 0))
        kern = _bmm_kernel_planar

    cost = pl.CostEstimate(
        flops=2 * B * M * K,
        transcendentals=0,
        bytes_accessed=B * M * K * in_item
        + B * K * jnp.dtype(z.dtype).itemsize
        + B * M * out_item,
    )

    out2d = pl.pallas_call(
        kern,
        out_shape=jax.ShapeDtypeStruct((B, M), OUT_DTYPE),
        grid_spec=pltpu.PrefetchScalarGridSpec(
            num_scalar_prefetch=0,
            grid=(nb,),
            in_specs=[
                y_spec,
                pl.BlockSpec((tb, K), lambda b: (b, 0)),
            ],
            out_specs=pl.BlockSpec((tb, M), lambda b: (b, 0)),
        ),
        compiler_params=pltpu.CompilerParams(
            dimension_semantics=("parallel",),          # shard batch tiles across TCs
            vmem_limit_bytes=tune["vmem_limit"],
        ),
        cost_estimate=cost,
    )(y_in, z2)

    return out2d[..., None]                             # (B, M, 1)


def _make_forward(use_fast):
    @jax.jit
    def ensemble_forward(x_scalar, y, z):
        """EnsembleModel.forward: if x > 1 -> bmm(y, z) else ones((B, M, 1))."""
        B, M, K = y.shape
        if z.shape != (B, K, 1):                        # trace-time shape check
            raise ValueError(f"z must be {(B, K, 1)}, got {z.shape}")

        def matmul_branch(y_in, z_in):
            return _batched_matvec(y_in, z_in, use_fast=use_fast)

        def ones_branch(y_in, z_in):
            # Skips the entire kernel + HBM traffic when x <= 1.
            return jnp.ones((B, M, 1), OUT_DTYPE)

        x = jnp.asarray(x_scalar, jnp.float32)
        return jax.lax.cond(x > 1.0, matmul_branch, ones_branch, y, z)

    return ensemble_forward


def build_ensemble_forward(y_example, z_example):
    """Prefer the no-transpose (strided deinterleave) path; fall back to the
    planar (B,K,M)-transpose path if it fails to lower or mismatches."""
    ref = jnp.einsum("bmk,bkn->bmn",
                     y_example.astype(jnp.float32), z_example.astype(jnp.float32))
    last_err = None
    for use_fast in (True, False):
        fwd = _make_forward(use_fast)
        try:
            out = jax.block_until_ready(fwd(jnp.float32(2.0), y_example, z_example))
            if jnp.allclose(out.astype(jnp.float32), ref, atol=5e-2, rtol=5e-2):
                return fwd
            last_err = RuntimeError(f"numeric mismatch (use_fast={use_fast})")
        except Exception as e:  # lowering or runtime failure on this variant
            last_err = e
    raise last_err


# --------------------------------------------------------------------------- #
# Self-test
# --------------------------------------------------------------------------- #
if __name__ == "__main__":
    # Small analogue of the original [1280, 2464, 4] x [1280, 4, 1] half inputs.
    B, M, K = 8, 256, 4
    key = jax.random.PRNGKey(0)
    ky, kz = jax.random.split(key)
    y = jax.random.uniform(ky, (B, M, K), dtype=jnp.float32).astype(jnp.bfloat16)
    z = jax.random.uniform(kz, (B, K, 1), dtype=jnp.float32).astype(jnp.bfloat16)

    forward = build_ensemble_forward(y, z)

    # Branch 1: x > 1 -> batched matmul
    out_mm = jax.block_until_ready(forward(jnp.float32(2.0), y, z))
    ref = jnp.einsum("bmk,bkn->bmn", y.astype(jnp.float32), z.astype(jnp.float32))
    assert out_mm.shape == (B, M, 1) and out_mm.dtype == jnp.dtype(OUT_DTYPE)
    err = float(jnp.max(jnp.abs(out_mm.astype(jnp.float32) - ref)))
    assert jnp.allclose(out_mm.astype(jnp.float32), ref, atol=5e-2, rtol=5e-2), err

    # Branch 2: x <= 1 -> ones (no kernel / no HBM read of y)
    out_ones = jax.block_until_ready(forward(jnp.float32(0.5), y, z))
    assert jnp.allclose(out_ones.astype(jnp.float32), jnp.ones((B, M, 1), jnp.float32))

    print("KERNEL_OK")
</pallas_src>

<mosaic_0001>
module attributes {stable_mosaic.version = 11 : i64} {
  func.func @_bmm_kernel_interleaved(%arg0: i32, %arg1: memref<8x1024xbf16, #tpu.memory_space<vmem>>, %arg2: memref<8x4xbf16, #tpu.memory_space<vmem>>, %arg3: memref<8x256xbf16, #tpu.memory_space<vmem>>) attributes {dimension_semantics = [#tpu.dimension_semantics<parallel>], iteration_bounds = array<i64: 1>, scalar_prefetch = 0 : i64, scratch_operands = 0 : i64, tpu.core_type = #tpu.core_type<tc>, window_params = [{transform_indices = @transform_0, window_bounds = array<i64: 8, 1024>}, {transform_indices = @transform_1, window_bounds = array<i64: 8, 4>}, {transform_indices = @transform_2, window_bounds = array<i64: 8, 256>}]} {
    %c0 = arith.constant 0 : index
    %c0_0 = arith.constant 0 : index
    %0 = vector.load %arg2[%c0, %c0_0] : memref<8x4xbf16, #tpu.memory_space<vmem>>, vector<8x4xbf16>
    %1 = arith.extf %0 : vector<8x4xbf16> to vector<8x4xf32>
    %c0_1 = arith.constant 0 : index
    %c0_2 = arith.constant 0 : index
    %2 = tpu.strided_load %arg1[%c0_1, %c0_2] {strides = array<i32: 1, 4>} : memref<8x1024xbf16, #tpu.memory_space<vmem>>, vector<8x256xbf16>
    %3 = arith.extf %2 : vector<8x256xbf16> to vector<8x256xf32>
    %4 = vector.extract_strided_slice %1 {offsets = [0, 0], sizes = [8, 1], strides = [1, 1]} : vector<8x4xf32> to vector<8x1xf32>
    %5 = vector.broadcast %4 : vector<8x1xf32> to vector<8x256xf32>
    %6 = arith.mulf %3, %5 : vector<8x256xf32>
    %c0_3 = arith.constant 0 : index
    %c1 = arith.constant 1 : index
    %7 = tpu.strided_load %arg1[%c0_3, %c1] {strides = array<i32: 1, 4>} : memref<8x1024xbf16, #tpu.memory_space<vmem>>, vector<8x256xbf16>
    %8 = arith.extf %7 : vector<8x256xbf16> to vector<8x256xf32>
    %9 = vector.extract_strided_slice %1 {offsets = [0, 1], sizes = [8, 1], strides = [1, 1]} : vector<8x4xf32> to vector<8x1xf32>
    %10 = vector.broadcast %9 : vector<8x1xf32> to vector<8x256xf32>
    %11 = arith.mulf %8, %10 : vector<8x256xf32>
    %12 = arith.addf %6, %11 : vector<8x256xf32>
    %c0_4 = arith.constant 0 : index
    %c2 = arith.constant 2 : index
    %13 = tpu.strided_load %arg1[%c0_4, %c2] {strides = array<i32: 1, 4>} : memref<8x1024xbf16, #tpu.memory_space<vmem>>, vector<8x256xbf16>
    %14 = arith.extf %13 : vector<8x256xbf16> to vector<8x256xf32>
    %15 = vector.extract_strided_slice %1 {offsets = [0, 2], sizes = [8, 1], strides = [1, 1]} : vector<8x4xf32> to vector<8x1xf32>
    %16 = vector.broadcast %15 : vector<8x1xf32> to vector<8x256xf32>
    %17 = arith.mulf %14, %16 : vector<8x256xf32>
    %18 = arith.addf %12, %17 : vector<8x256xf32>
    %c0_5 = arith.constant 0 : index
    %c3 = arith.constant 3 : index
    %19 = tpu.strided_load %arg1[%c0_5, %c3] {strides = array<i32: 1, 4>} : memref<8x1024xbf16, #tpu.memory_space<vmem>>, vector<8x256xbf16>
    %20 = arith.extf %19 : vector<8x256xbf16> to vector<8x256xf32>
    %21 = vector.extract_strided_slice %1 {offsets = [0, 3], sizes = [8, 1], strides = [1, 1]} : vector<8x4xf32> to vector<8x1xf32>
    %22 = vector.broadcast %21 : vector<8x1xf32> to vector<8x256xf32>
    %23 = arith.mulf %20, %22 : vector<8x256xf32>
    %24 = arith.addf %18, %23 : vector<8x256xf32>
    %25 = arith.truncf %24 : vector<8x256xf32> to vector<8x256xbf16>
    %c0_6 = arith.constant 0 : index
    %c0_7 = arith.constant 0 : index
    %26 = vector.load %arg3[%c0_6, %c0_7] : memref<8x256xbf16, #tpu.memory_space<vmem>>, vector<8x256xbf16>
    tpu.vector_store %arg3[%c0_6, %c0_7], %25 {strides = array<i32>} : memref<8x256xbf16, #tpu.memory_space<vmem>>, vector<8x256xbf16>,
    return
  }
  func.func @transform_0(%arg0: i32) -> (i32, i32) {
    %c0_i32 = arith.constant 0 : i32
    %c0_i32_0 = arith.constant 0 : i32
    return %arg0, %c0_i32 : i32, i32
  }
  func.func @transform_1(%arg0: i32) -> (i32, i32) {
    %c0_i32 = arith.constant 0 : i32
    %c0_i32_0 = arith.constant 0 : i32
    return %arg0, %c0_i32 : i32, i32
  }
  func.func @transform_2(%arg0: i32) -> (i32, i32) {
    %c0_i32 = arith.constant 0 : i32
    %c0_i32_0 = arith.constant 0 : i32
    return %arg0, %c0_i32 : i32, i32
  }
}

module attributes {stable_mosaic.version = 11 : i64} {
  func.func @_bmm_kernel_planar(%arg0: i32, %arg1: memref<8x4x256xbf16, #tpu.memory_space<vmem>>, %arg2: memref<8x4xbf16, #tpu.memory_space<vmem>>, %arg3: memref<8x256xbf16, #tpu.memory_space<vmem>>) attributes {dimension_semantics = [#tpu.dimension_semantics<parallel>], iteration_bounds = array<i64: 1>, scalar_prefetch = 0 : i64, scratch_operands = 0 : i64, tpu.core_type = #tpu.core_type<tc>, window_params = [{transform_indices = @transform_0, window_bounds = array<i64: 8, 4, 256>}, {transform_indices = @transform_1, window_bounds = array<i64: 8, 4>}, {transform_indices = @transform_2, window_bounds = array<i64: 8, 256>}]} {
    %c0 = arith.constant 0 : index
    %c0_0 = arith.constant 0 : index
    %0 = vector.load %arg2[%c0, %c0_0] : memref<8x4xbf16, #tpu.memory_space<vmem>>, vector<8x4xbf16>
    %1 = arith.extf %0 : vector<8x4xbf16> to vector<8x4xf32>
    %c0_1 = arith.constant 0 : index
    %c0_2 = arith.constant 0 : index
    %c0_3 = arith.constant 0 : index
    %2 = vector.load %arg1[%c0_1, %c0_2, %c0_3] : memref<8x4x256xbf16, #tpu.memory_space<vmem>>, vector<8x1x256xbf16>
    %3 = vector.shape_cast %2 : vector<8x1x256xbf16> to vector<8x256xbf16>
    %4 = arith.extf %3 : vector<8x256xbf16> to vector<8x256xf32>
    %5 = vector.extract_strided_slice %1 {offsets = [0, 0], sizes = [8, 1], strides = [1, 1]} : vector<8x4xf32> to vector<8x1xf32>
    %6 = vector.broadcast %5 : vector<8x1xf32> to vector<8x256xf32>
    %7 = arith.mulf %4, %6 : vector<8x256xf32>
    %c0_4 = arith.constant 0 : index
    %c1 = arith.constant 1 : index
    %c0_5 = arith.constant 0 : index
    %8 = vector.load %arg1[%c0_4, %c1, %c0_5] : memref<8x4x256xbf16, #tpu.memory_space<vmem>>, vector<8x1x256xbf16>
    %9 = vector.shape_cast %8 : vector<8x1x256xbf16> to vector<8x256xbf16>
    %10 = arith.extf %9 : vector<8x256xbf16> to vector<8x256xf32>
    %11 = vector.extract_strided_slice %1 {offsets = [0, 1], sizes = [8, 1], strides = [1, 1]} : vector<8x4xf32> to vector<8x1xf32>
    %12 = vector.broadcast %11 : vector<8x1xf32> to vector<8x256xf32>
    %13 = arith.mulf %10, %12 : vector<8x256xf32>
    %14 = arith.addf %7, %13 : vector<8x256xf32>
    %c0_6 = arith.constant 0 : index
    %c2 = arith.constant 2 : index
    %c0_7 = arith.constant 0 : index
    %15 = vector.load %arg1[%c0_6, %c2, %c0_7] : memref<8x4x256xbf16, #tpu.memory_space<vmem>>, vector<8x1x256xbf16>
    %16 = vector.shape_cast %15 : vector<8x1x256xbf16> to vector<8x256xbf16>
    %17 = arith.extf %16 : vector<8x256xbf16> to vector<8x256xf32>
    %18 = vector.extract_strided_slice %1 {offsets = [0, 2], sizes = [8, 1], strides = [1, 1]} : vector<8x4xf32> to vector<8x1xf32>
    %19 = vector.broadcast %18 : vector<8x1xf32> to vector<8x256xf32>
    %20 = arith.mulf %17, %19 : vector<8x256xf32>
    %21 = arith.addf %14, %20 : vector<8x256xf32>
    %c0_8 = arith.constant 0 : index
    %c3 = arith.constant 3 : index
    %c0_9 = arith.constant 0 : index
    %22 = vector.load %arg1[%c0_8, %c3, %c0_9] : memref<8x4x256xbf16, #tpu.memory_space<vmem>>, vector<8x1x256xbf16>
    %23 = vector.shape_cast %22 : vector<8x1x256xbf16> to vector<8x256xbf16>
    %24 = arith.extf %23 : vector<8x256xbf16> to vector<8x256xf32>
    %25 = vector.extract_strided_slice %1 {offsets = [0, 3], sizes = [8, 1], strides = [1, 1]} : vector<8x4xf32> to vector<8x1xf32>
    %26 = vector.broadcast %25 : vector<8x1xf32> to vector<8x256xf32>
    %27 = arith.mulf %24, %26 : vector<8x256xf32>
    %28 = arith.addf %21, %27 : vector<8x256xf32>
    %29 = arith.truncf %28 : vector<8x256xf32> to vector<8x256xbf16>
    %c0_10 = arith.constant 0 : index
    %c0_11 = arith.constant 0 : index
    %30 = vector.load %arg3[%c0_10, %c0_11] : memref<8x256xbf16, #tpu.memory_space<vmem>>, vector<8x256xbf16>
    tpu.vector_store %arg3[%c0_10, %c0_11], %29 {strides = array<i32>} : memref<8x256xbf16, #tpu.memory_space<vmem>>, vector<8x256xbf16>,
    return
  }
  func.func @transform_0(%arg0: i32) -> (i32, i32, i32) {
    %c0_i32 = arith.constant 0 : i32
    %c0_i32_0 = arith.constant 0 : i32
    %c0_i32_1 = arith.constant 0 : i32
    return %arg0, %c0_i32, %c0_i32_0 : i32, i32, i32
  }
  func.func @transform_1(%arg0: i32) -> (i32, i32) {
    %c0_i32 = arith.constant 0 : i32
    %c0_i32_0 = arith.constant 0 : i32
    return %arg0, %c0_i32 : i32, i32
  }
  func.func @transform_2(%arg0: i32) -> (i32, i32) {
    %c0_i32 = arith.constant 0 : i32
    %c0_i32_0 = arith.constant 0 : i32
    return %arg0, %c0_i32 : i32, i32
  }
}

</mosaic_0001>

<bundles_post_ra>
// kernel: branch_1_fun.1
= control target key start
LH: loop header
LB: loop body
LE: loop exit
PB: predicated region body
PF: predicated region fallthrough
CT: control target
= control target key end

     0   :  { %7 = vsyncpa [#allocation3], 0  ;;  %s910_s0 = inlined_call_operand.hbm [shape: bf16[8,4,256], index: 0, kind: input, shape index: {}]   ;;  %s911_s1 = inlined_call_operand.vmem [shape: bf16[8,4], index: 1, kind: input, shape index: {}]   ;;  %s912_s2 = inlined_call_operand.hbm [shape: bf16[8,256], index: 2, kind: output, shape index: {}]  }
   0x1   :  { %8 = vsyncpa [#allocation4], 0  ;;  %s653_s9 = smov [#allocation2]   ;;  %s605_s13 = scalar_lea.hbm %s910_s0, 512 }
   0x2   :  { %s14_s10 = sshll.u32 %s653_s9, 4  ;;  %p606_p0 = scmp.ne.s32.totalorder %s910_s0, %s605_s13  ;;  %s15_s10 = int_to_ptr.vmem [resolvable:$true] %s14_s10 }
   0x3   :  { %p609_p1 = scmp.lt.u32.totalorder %s605_s13, %s910_s0 }
   0x5   :  { %p611_p2 = pnand %p609_p1, %p606_p0 }
   0x7   :  { %614 = shalt.err (!%p611_p2)
}
   0x8   :  { %s615_s18 = scalar_lea.vmem %s15_s10, 512  ;;  %p620_p4 = scmp.lt.s32.totalorder %s15_s10, %s15_s10 }
   0x9   :  { %p616_p3 = scmp.ne.s32.totalorder %s15_s10, %s615_s18  ;;  %p621_p5 = scmp.lt.s32.totalorder %s615_s18, %s615_s18 }
   0xb   :  { %p622_p6 = por %p621_p5, %p620_p4 }
   0xd   :  { %p623_p7 = pnand %p622_p6, %p616_p3 }
   0xf   :  { %626 = shalt.err (!%p623_p7)
}
  0x10   :  { %s654_s19 = smov 64   ;;  %s655_s20 = smov 4  }
  0x11   :  { %20 = dma.hbm_to_vmem [thread:$0]  %s910_s0, 512, %s15_s10, [#allocation3], %s654_s19, %s654_s19, %s655_s20  }
  0x12   :  { %649 = dma.done.wait [#allocation3], 512  }
  0x13   :  { %650 = vsyncadd [#allocation3], 4294966784  ;;  %v656_v0 = vmov 2   ;;  %v657_v1 = vmov 1   ;;  %v26_v2 = vld [vmem:[%s911_s1] sm:$0xf]  ;;  %v51_v8 = vlaneseq }
  0x14   :  { %602 = vset.pattern.permute.xlu1 %v656_v0  ;;  %600 = vset.pattern.permute.xlu0 %v657_v1  ;;  %v27_v3 = vunpack.c.l.bf16 %v26_v2  ;;  %v658_v4 = vmov 3   ;;  %v659_v5 = vmov 0   ;;  %v660_v6 = vmov 839922192   ;;  %v693_v14 = vld [vmem:[#allocation2 + $0x4] sm:$0x5] }
  0x15   :  { %v49_v7 = vunpack.c.l.s4 %v660_v6  ;;  %v661_v9 = vmov 1985246804   ;;  %v52_v12 = vshrl.u32 %v51_v8, 7  ;;  %v695_v15 = vld [vmem:[#allocation2 + $0x8] sm:$0x5]  ;;  %v37_v25 = vunpack.c.l.bf16 %v693_v14  ;;  %s662_s0 = smov [#allocation5]  }
  0x16   :  { %180 = vperm.xlu1 %602, %v27_v3   ;;  %85 = vperm.xlu0 %600, %v27_v3   ;;  %v56_v10 = vunpack.c.l.s4 %v661_v9  ;;  %v697_v16 = vld [vmem:[#allocation2 + $0xc] sm:$0x5]  ;;  %v699_v17 = vld [vmem:[#allocation2 + $0x14] sm:$0x5]  ;;  %v701_v18 = vld [vmem:[#allocation2 + $0x18] sm:$0x5]  ;;  %v38_v30 = vunpack.c.l.bf16 %v695_v15 }
  0x17   :  { %v50_v11 = vunpack.c.0.s8 %v49_v7  ;;  %v703_v19 = vld [vmem:[#allocation2 + $0x1c] sm:$0x5]  ;;  %v709_v22 = vld [vmem:[#allocation2] sm:$0xa]  ;;  %v711_v23 = vld [vmem:[#allocation2 + $0x8] sm:$0xa]  ;;  %v39_v31 = vunpack.c.l.bf16 %v697_v16  ;;  %v915_v32 = vunpack.c.l.bf16 %v699_v17  ;;  %v914_v33 = vunpack.c.l.bf16 %v701_v18 }
  0x18   :  { %v57_v13 = vunpack.c.0.s8 %v56_v10  ;;  %v713_v24 = vld [vmem:[#allocation2 + $0x18] sm:$0xa]  ;;  %v716_v26 = vsub.s32 0, %v52_v12  ;;  %v718_v27 = vsub.s32 4, %v52_v12  ;;  %v720_v28 = vld [vmem:[#allocation2 + $0x4] sm:$0xa]  ;;  %v913_v37 = vunpack.c.l.bf16 %v703_v19 }
  0x19   :  { %v705_v20 = vsub.s32 %v50_v11, %v52_v12  ;;  %v722_v29 = vld [vmem:[#allocation2 + $0x10] sm:$0xa]  ;;  %v728_v34 = vld [vmem:[#allocation2 + $0x14] sm:$0xa]  ;;  %v730_v35 = vld [vmem:[#allocation2 + $0xc] sm:$0xa]  ;;  %v171_v39 = vunpack.c.l.bf16 %v709_v22  ;;  %v173_v40 = vunpack.c.l.bf16 %v711_v23  ;;  %v177_v41 = vunpack.c.l.bf16 %v713_v24 }
  0x1a   :  { %603 = vset.pattern.permute.xlu1 %v658_v4  ;;  %601 = vset.pattern.permute.xlu0 %v659_v5  ;;  %v707_v21 = vsub.s32 %v57_v13, %v52_v12  ;;  %v732_v36 = vld [vmem:[#allocation2 + $0x1c] sm:$0xa]  ;;  %v738_v43 = vld [vmem:[#allocation2] sm:$0x5]  ;;  %v172_v46 = vunpack.c.l.bf16 %v720_v28  ;;  %v175_v48 = vunpack.c.l.bf16 %v722_v29  ;;  %v176_v49 = vunpack.c.l.bf16 %v728_v34  ;;  %v748_v52 = vld [vmem:[#allocation2 + $0x10] sm:$0x5] }
  0x1b   :  { %259 = vperm.xlu1 %603, %v27_v3   ;;  %46 = vperm.xlu0 %601, %v27_v3   ;;  %v174_v50 = vunpack.c.l.bf16 %v730_v35  ;;  %v178_v51 = vunpack.c.l.bf16 %v732_v36  ;;  %v36_v56 = vunpack.c.l.bf16 %v738_v43  ;;  %v40_v0 = vunpack.c.l.bf16 %v748_v52  ;;  %s541_s1 = sshll.u32 %s662_s0, 4  ;;  %s542_s1 = int_to_ptr.vmem [resolvable:$true] %s541_s1 }
  0x1c   :  { %v918_v43 = vunpack.c.l.bf16 %v703_v19  ;;  %vm498_vm0 = vcmask 1041409   ;;  %vm501_vm1 = vcmask 1042434   ;;  %vm504_vm2 = vcmask 1043459   ;;  %s627_s25 = scalar_lea.vmem %s542_s1, 128  ;;  %p632_p9 = scmp.lt.s32.totalorder %s542_s1, %s542_s1 }
  0x1d   :  { %vm507_vm3 = vcmask 1044484   ;;  %vm510_vm4 = vcmask 1045509   ;;  %vm513_vm5 = vcmask 1046534   ;;  %vm516_vm6 = vcmask 1047559   ;;  %p628_p8 = scmp.ne.s32.totalorder %s542_s1, %s627_s25  ;;  %p633_p10 = scmp.lt.s32.totalorder %s627_s25, %s627_s25 }
  0x1f   :  { %604 = vset.pattern.permute.xlu0 %v658_v4  ;;  %p634_p11 = por %p633_p10, %p632_p9 }
  0x21   :  { %p635_p12 = pnand %p634_p11, %p628_p8 }
  0x95   :  { %v86_v38 = vpop.permute.xlu0 %85  ;;  %v181_v42 = vpop.permute.xlu1 %180 }
  0x96   :  { %v93_v44 = vrot.slane %v86_v38, %v705_v20  ;;  %v100_v45 = vrot.slane %v86_v38, %v707_v21  ;;  %v188_v47 = vrot.slane %v181_v42, %v705_v20  ;;  %v195_v55 = vrot.slane %v181_v42, %v707_v21 }
  0x98   :  { %v102_v53 = vrot.slane %v93_v44, 1  ;;  %v103_v54 = vrot.slane %v93_v44, 2  ;;  %v105_v57 = vrot.slane %v100_v45, 1  ;;  %v106_v58 = vrot.slane %v100_v45, 2 }
  0x99   :  { %v754_v59 = vmul.f32 %v93_v44, %v37_v25  ;;  %v758_v60 = vmul.f32 %v100_v45, %v915_v32  ;;  %v196_v62 = vrot.slane %v188_v47, 6  ;;  %v197_v63 = vrot.slane %v188_v47, 7 }
  0x9a   :  { %v762_v61 = vmul.f32 %v102_v53, %v38_v30  ;;  %v101_v1 = vrot.slane %v93_v44, 7  ;;  %v104_v2 = vrot.slane %v100_v45, 7  ;;  %v767_v3 = vmul.f32 %v103_v54, %v39_v31 }
  0x9b   :  { %v771_v4 = vmul.f32 %v105_v57, %v914_v33  ;;  %v775_v5 = vmul.f32 %v106_v58, %v913_v37  ;;  %v198_v7 = vrot.slane %v188_v47, 1  ;;  %v199_v8 = vrot.slane %v195_v55, 6 }
  0x9c   :  { %v200_v11 = vrot.slane %v195_v55, 7  ;;  %v201_v12 = vrot.slane %v195_v55, 1  ;;  %v782_v13 = vmul.f32 %v196_v62, %v171_v39  ;;  %v786_v35 = vmul.f32 %v197_v63, %v172_v46 }
  0x9d   :  { %v790_v38 = vmul.f32 %v188_v47, %v173_v40  ;;  %v794_v42 = vmul.f32 %v199_v8, %v175_v48  ;;  %v802_v45 = vmul.f32 %v195_v55, %v177_v41  ;;  %v804_v53 = vmul.f32 %v198_v7, %v174_v50  ;;  %v260_v47 = vpop.permute.xlu1 %259  ;;  %v47_v8 = vpop.permute.xlu0 %46 }
  0x9e   :  { %v798_v44 = vmul.f32 %v200_v11, %v176_v49  ;;  %v808_v54 = vmul.f32 %v201_v12, %v178_v51  ;;  %v553_v57 = vrot.slane %v767_v3, 9  ;;  %v556_v58 = vrot.slane %v771_v4, 9 }
  0x9f   :  { %v557_v62 = vrot.slane %v775_v5, 9  ;;  %v558_v63 = vrot.slane %v782_v13, 10  ;;  %v559_v11 = vrot.slane %v786_v35, 10  ;;  %v560_v55 = vrot.slane %v790_v38, 10 }
  0xa0   :  { %v562_v7 = vrot.slane %v794_v42, 10  ;;  %v563_v10 = vrot.slane %v798_v44, 10  ;;  %v564_v12 = vrot.slane %v802_v45, 10  ;;  %v561_v9 = vrot.slane %v804_v53, 10 }
  0xa1   :  { %v267_v3 = vrot.slane %v260_v47, %v705_v20  ;;  %v274_v4 = vrot.slane %v260_v47, %v707_v21  ;;  %v565_v5 = vrot.slane %v808_v54, 10  ;;  %v115_v13 = vmul.f32 %v101_v1, %v36_v56 }
  0xa2   :  { %v119_v35 = vmul.f32 %v104_v2, %v40_v0  ;;  %v54_v38 = vrot.slane %v47_v8, %v705_v20  ;;  %v61_v32 = vrot.slane %v47_v8, %v707_v21  ;;  %v919_v14 = vrot.slane %v754_v59, 9 }
  0xa3   :  { %v275_v42 = vrot.slane %v267_v3, 5  ;;  %v276_v44 = vrot.slane %v267_v3, 6  ;;  %v277_v6 = vrot.slane %v267_v3, 7  ;;  %v278_v45 = vrot.slane %v274_v4, 5 }
  0xa4   :  { %v279_v37 = vrot.slane %v274_v4, 6  ;;  %v280_v53 = vrot.slane %v274_v4, 7  ;;  %v292_v33 = vmul.f32 %v267_v3, %v174_v50  ;;  %v843_v21 = vmul.f32 %v274_v4, %v178_v51 }
  0xa5   :  { %v289_v54 = vmul.f32 %v275_v42, %v171_v39  ;;  %v290_v1 = vmul.f32 %v276_v44, %v172_v46  ;;  %v291_v2 = vmul.f32 %v277_v6, %v173_v40  ;;  %v293_v20 = vmul.f32 %v278_v45, %v175_v48 }
  0xa6   :  { %v294_v47 = vmul.f32 %v279_v37, %v176_v49  ;;  %v295_v50 = vmul.f32 %v280_v53, %v177_v41  ;;  %v569_v22 = vrot.slane %v292_v33, 11  ;;  %v550_v6 = vrot.slane %v115_v13, 9 }
  0xa7   :  { %v566_v39 = vrot.slane %v289_v54, 11  ;;  %v567_v28 = vrot.slane %v290_v1, 11  ;;  %v568_v46 = vrot.slane %v291_v2, 11  ;;  %v570_v8 = vrot.slane %v293_v20, 11 }
  0xa8   :  { %v571_v23 = vrot.slane %v294_v47, 11  ;;  %v572_v40 = vrot.slane %v295_v50, 11  ;;  %v554_v29 = vrot.slane %v119_v35, 9  ;;  %v62_v48 = vrot.slane %v54_v38, 1 }
  0xa9   :  { %v63_v3 = vrot.slane %v54_v38, 2  ;;  %v64_v34 = vrot.slane %v54_v38, 3  ;;  %v65_v37 = vrot.slane %v61_v32, 1  ;;  %v66_v49 = vrot.slane %v61_v32, 2 }
  0xaa   :  { %v67_v24 = vrot.slane %v61_v32, 3  ;;  %v76_v36 = vmul.f32 %v54_v38, %v36_v56  ;;  %v80_v33 = vmul.f32 %v61_v32, %v40_v0  ;;  %v77_v41 = vmul.f32 %v62_v48, %v37_v25 }
  0xab   :  { %v78_v51 = vmul.f32 %v63_v3, %v38_v30  ;;  %v79_v4 = vmul.f32 %v64_v34, %v39_v31  ;;  %v916_v13 = vunpack.c.l.bf16 %v699_v17  ;;  %v917_v42 = vunpack.c.l.bf16 %v701_v18 }
  0xac   :  { %v83_v56 = vmul.f32 %v67_v24, %v918_v43  ;;  %v155_v52 = vadd.f32 %v550_v6, %v76_v36  ;;  %v159_v32 = vadd.f32 %v554_v29, %v80_v33  ;;  %v156_v25 = vadd.f32 %v919_v14, %v77_v41 }
  0xad   :  { %v81_v35 = vmul.f32 %v65_v37, %v916_v13  ;;  %v82_v44 = vmul.f32 %v66_v49, %v917_v42  ;;  %v920_v15 = vrot.slane %v762_v61, 9  ;;  %v158_v0 = vadd.f32 %v553_v57, %v79_v4 }
  0xae   :  { %v921_v16 = vrot.slane %v758_v60, 9  ;;  %v162_v38 = vadd.f32 %v557_v62, %v83_v56  ;;  %v250_v45 = vadd.f32 %v558_v63, %v155_v52  ;;  %v254_v18 = vadd.f32 %v562_v7, %v159_v32 }
  0xaf   :  { %v157_v30 = vadd.f32 %v920_v15, %v78_v51  ;;  %v161_v17 = vadd.f32 %v556_v58, %v82_v44  ;;  %v251_v53 = vadd.f32 %v559_v11, %v156_v25  ;;  %v253_v19 = vadd.f32 %v561_v9, %v158_v0 }
  0xb0   :  { %v160_v31 = vadd.f32 %v921_v16, %v81_v35  ;;  %v257_v20 = vadd.f32 %v565_v5, %v162_v38  ;;  %v329_v47 = vadd.f32 %v566_v39, %v250_v45  ;;  %v333_v59 = vadd.f32 %v570_v8, %v254_v18 }
  0xb1   :  { %v252_v54 = vadd.f32 %v560_v55, %v157_v30  ;;  %v256_v2 = vadd.f32 %v564_v12, %v161_v17  ;;  %v330_v50 = vadd.f32 %v567_v28, %v251_v53  ;;  %v332_v61 = vadd.f32 %v569_v22, %v253_v19 }
  0xb2   :  { %v255_v1 = vadd.f32 %v563_v10, %v160_v31  ;;  %v573_v57 = vrot.slane %v843_v21, 11  ;;  %v348_v58 = vrot.slane %v329_v47, %v716_v26  ;;  %v352_v62 = vrot.slane %v329_v47, %v718_v27 }
  0xb3   :  { %v331_v6 = vadd.f32 %v568_v46, %v252_v54  ;;  %v335_v60 = vadd.f32 %v572_v40, %v256_v2  ;;  %v356_v63 = vrot.slane %v330_v50, %v716_v26  ;;  %v360_v9 = vrot.slane %v330_v50, %v718_v27 }
  0xb4   :  { %v334_v29 = vadd.f32 %v571_v23, %v255_v1  ;;  %v372_v55 = vrot.slane %v332_v61, %v716_v26  ;;  %v376_v7 = vrot.slane %v332_v61, %v718_v27  ;;  %v380_v12 = vrot.slane %v333_v59, %v716_v26 }
  0xb5   :  { %v364_v10 = vrot.slane %v331_v6, %v716_v26  ;;  %v368_v11 = vrot.slane %v331_v6, %v718_v27  ;;  %v384_v5 = vrot.slane %v333_v59, %v718_v27  ;;  %v583_v21 = vpack.c.bf16 %v360_v9, %v356_v63 }
  0xb6   :  { %v336_v39 = vadd.f32 %v573_v57, %v257_v20  ;;  %v388_v28 = vrot.slane %v334_v29, %v716_v26  ;;  %v585_v46 = vpack.c.bf16 %v376_v7, %v372_v55  ;;  %v392_v8 = vrot.slane %v334_v29, %v718_v27 }
  0xb7   :  { %v584_v22 = vpack.c.bf16 %v368_v11, %v364_v10  ;;  %v582_v23 = vpack.c.bf16 %v352_v62, %v348_v58  ;;  %v483_v40 = vunpack.c.l.b16 %v583_v21  ;;  %v396_v48 = vrot.slane %v335_v60, %v716_v26 }
  0xb8   :  { %v400_v3 = vrot.slane %v335_v60, %v718_v27  ;;  %v404_v34 = vrot.slane %v336_v39, %v716_v26  ;;  %v408_v37 = vrot.slane %v336_v39, %v718_v27  ;;  %v586_v49 = vpack.c.bf16 %v384_v5, %v380_v12 }
  0xb9   :  { %v587_v24 = vpack.c.bf16 %v392_v8, %v388_v28  ;;  %v485_v33 = vunpack.c.l.b16 %v584_v22  ;;  %v484_v41 = vunpack.c.h.b16 %v583_v21  ;;  %v486_v4 = vunpack.c.h.b16 %v584_v22 }
  0xba   :  { %v588_v36 = vpack.c.bf16 %v400_v3, %v396_v48  ;;  %v589_v51 = vpack.c.bf16 %v408_v37, %v404_v34  ;;  %v487_v13 = vunpack.c.l.b16 %v585_v46  ;;  %v481_v35 = vunpack.c.l.b16 %v582_v23 }
  0xbb   :  { %v482_v42 = vunpack.c.h.b16 %v582_v23  ;;  %v489_v44 = vunpack.c.l.b16 %v586_v49  ;;  %v488_v43 = vunpack.c.h.b16 %v585_v46  ;;  %v491_v56 = vunpack.c.l.b16 %v587_v24 }
  0xbc   :  { %v497_v52 = vrot.slane %v483_v40, 7  ;;  %v500_v26 = vrot.slane %v485_v33, 6  ;;  %v490_v32 = vunpack.c.h.b16 %v586_v49  ;;  %v492_v27 = vunpack.c.h.b16 %v587_v24 }
  0xbd   :  { %v493_v14 = vunpack.c.l.b16 %v588_v36  ;;  %v495_v25 = vunpack.c.l.b16 %v589_v51  ;;  %v503_v30 = vrot.slane %v487_v13, 5  ;;  %v518_v0 = vrot.slane %v484_v41, 7 }
  0xbe   :  { %v499_v15 = vsel %vm498_vm0, %v497_v52, %v481_v35  ;;  %v520_v16 = vrot.slane %v486_v4, 6  ;;  %v494_v31 = vunpack.c.h.b16 %v588_v36  ;;  %v496_v17 = vunpack.c.h.b16 %v589_v51 }
  0xbf   :  { %v502_v38 = vsel %vm501_vm1, %v500_v26, %v499_v15  ;;  %v506_v45 = vrot.slane %v489_v44, 4  ;;  %v509_v53 = vrot.slane %v491_v56, 3  ;;  %v519_v54 = vsel %vm498_vm0, %v518_v0, %v482_v42 }
  0xc0   :  { %v505_v18 = vsel %vm504_vm2, %v503_v30, %v502_v38  ;;  %v522_v19 = vrot.slane %v488_v43, 5  ;;  %v512_v2 = vrot.slane %v493_v14, 2  ;;  %v521_v20 = vsel %vm501_vm1, %v520_v16, %v519_v54 }
  0xc1   :  { %v508_v1 = vsel %vm507_vm3, %v506_v45, %v505_v18  ;;  %v524_v47 = vrot.slane %v490_v32, 4  ;;  %v515_v50 = vrot.slane %v495_v25, 1  ;;  %v526_v61 = vrot.slane %v492_v27, 3 }
  0xc2   :  { %v511_v59 = vsel %vm510_vm4, %v509_v53, %v508_v1  ;;  %v523_v6 = vsel %vm504_vm2, %v522_v19, %v521_v20  ;;  %v528_v60 = vrot.slane %v494_v31, 2  ;;  %v530_v63 = vrot.slane %v496_v17, 1 }
  0xc3   :  { %v514_v29 = vsel %vm513_vm5, %v512_v2, %v511_v59  ;;  %v525_v57 = vsel %vm507_vm3, %v524_v47, %v523_v6 }
  0xc4   :  { %v517_v58 = vsel %vm516_vm6, %v515_v50, %v514_v29  ;;  %v527_v62 = vsel %vm510_vm4, %v526_v61, %v525_v57 }
  0xc5   :  { %v529_v9 = vsel %vm513_vm5, %v528_v60, %v527_v62 }
  0xc6   :  { %v531_v10 = vsel %vm516_vm6, %v530_v63, %v529_v9 }
  0xc7   :  { %v532_v11 = vpack.c.b16 %v531_v10, %v517_v58 }
  0xc9   :  { %534 = vst [vmem:[#allocation5] sm:$0xff] %v532_v11 }
  0xca   :  { %638 = shalt.err (!%p635_p12)
}
  0xcb   :  { %s639_s28 = scalar_lea.hbm %s912_s2, 128 }
  0xcc   :  { %p640_p13 = scmp.ne.s32.totalorder %s912_s2, %s639_s28  ;;  %p643_p0 = scmp.lt.u32.totalorder %s639_s28, %s912_s2 }
  0xce   :  { %p645_p1 = pnand %p643_p0, %p640_p13 }
  0xd0   :  { %648 = shalt.err (!%p645_p1)
}
  0xd1   :  { %544 = dma.vmem_to_hbm [thread:$0]  %s542_s1, 128, %s912_s2, [#allocation4]  }
  0xd2   :  { %651 = dma.done.wait [#allocation4], 128  }
  0xd3   :  { %652 = vsyncadd [#allocation4], 4294967168 }
  0xd4   :  { %548 = vsyncpa [#allocation3], 1 }
  0xd5   :  { %549 = vsyncpa [#allocation4], 1 }

</bundles_post_ra>
